<compile_context>
chip_gen: v6e
topology: v6e:2x2x1
jax: 0.10.0
libtpu: 0.0.40
codegen_flags: <defaults>
</compile_context>

<pallas_src>
import functools

import jax
import jax.numpy as jnp
from jax.experimental import pallas as pl
from jax.experimental.pallas import tpu as pltpu

INPUT_CHANNELS = 4
INPUT_WIDTH = 150
FC_NUM_UNITS = 8
OUTPUT_UNITS = 4
IN_FEATURES = INPUT_CHANNELS * INPUT_WIDTH   # 600
K_PAD = 640                                  # 600 padded up to a multiple of 128
MAX_TB = 1024                                # max rows per grid step (batch tile)


def _mlp_kernel(x_ref, w1_ref, b1_ref, w2_ref, b2_ref, o_ref):
    # x_ref:  (TB, 640)   w1_ref: (640, 8)   b1_ref: (1, 8)
    # w2_ref: (8, 4)      b2_ref: (1, 4)     o_ref:  (TB, 4)
    h = jnp.dot(x_ref[...], w1_ref[...], preferred_element_type=jnp.float32)
    h = jnp.maximum(h + b1_ref[...], 0.0)          # bias + ReLU (VPU)
    # Second layer: K=8, N=4 — tiny; keep as a single dot, h stays in vregs.
    y = jnp.dot(h, w2_ref[...], preferred_element_type=jnp.float32)
    o_ref[...] = (y + b2_ref[...]).astype(o_ref.dtype)


def _round_up(x, m):
    return (x + m - 1) // m * m


@jax.jit
def mlp_forward(x, w1, b1, w2, b2):
    """x: (B, C, W) float32 -> (B, OUTPUT_UNITS) float32."""
    B = x.shape[0]
    x_flat = x.reshape(B, -1)                      # Flatten (NCW row-major)

    # Pad K: 600 -> 640 lanes (zero pad => exact math, aligned MXU feed).
    x_flat = jnp.pad(x_flat, ((0, 0), (0, K_PAD - IN_FEATURES)))
    w1_p = jnp.pad(w1, ((0, K_PAD - IN_FEATURES), (0, 0)))

    # Batch tile: multiple of 8 sublanes, capped at MAX_TB; pad B to a multiple.
    tb = min(MAX_TB, _round_up(B, 8))
    b_pad = _round_up(B, tb)
    if b_pad != B:
        x_flat = jnp.pad(x_flat, ((0, b_pad - B), (0, 0)))

    b1_2d = b1.reshape(1, FC_NUM_UNITS)
    b2_2d = b2.reshape(1, OUTPUT_UNITS)

    out = pl.pallas_call(
        _mlp_kernel,
        out_shape=jax.ShapeDtypeStruct((b_pad, OUTPUT_UNITS), jnp.float32),
        grid_spec=pl.GridSpec(
            grid=(b_pad // tb,),
            in_specs=[
                pl.BlockSpec((tb, K_PAD), lambda i: (i, 0)),               # x stream
                pl.BlockSpec((K_PAD, FC_NUM_UNITS), lambda i: (0, 0)),     # w1 resident
                pl.BlockSpec((1, FC_NUM_UNITS), lambda i: (0, 0)),         # b1 resident
                pl.BlockSpec((FC_NUM_UNITS, OUTPUT_UNITS), lambda i: (0, 0)),  # w2 resident
                pl.BlockSpec((1, OUTPUT_UNITS), lambda i: (0, 0)),         # b2 resident
            ],
            out_specs=pl.BlockSpec((tb, OUTPUT_UNITS), lambda i: (i, 0)),
        ),
        compiler_params=pltpu.CompilerParams(
            dimension_semantics=("parallel",)),    # megacore sharding on v7x
    )(x_flat, w1_p, b1_2d, w2, b2_2d)

    return out[:B]
    # TODO(synk): optional bf16 fast path (stream x/w1 as bf16 with f32 acc)
    # halves HBM traffic but relaxes tolerance to ~1e-2; kept f32 by default.


def _init_params():
    # Deterministic init mimicking torch.nn.Linear default: U(-k, k), k=1/sqrt(fan_in)
    k0, k1, k2, k3 = jax.random.split(jax.random.PRNGKey(42), 4)
    k_fc1 = 1.0 / jnp.sqrt(IN_FEATURES)
    k_fc2 = 1.0 / jnp.sqrt(FC_NUM_UNITS)
    w1 = jax.random.uniform(k0, (IN_FEATURES, FC_NUM_UNITS),
                            minval=-k_fc1, maxval=k_fc1, dtype=jnp.float32)
    b1 = jax.random.uniform(k1, (FC_NUM_UNITS,),
                            minval=-k_fc1, maxval=k_fc1, dtype=jnp.float32)
    w2 = jax.random.uniform(k2, (FC_NUM_UNITS, OUTPUT_UNITS),
                            minval=-k_fc2, maxval=k_fc2, dtype=jnp.float32)
    b2 = jax.random.uniform(k3, (OUTPUT_UNITS,),
                            minval=-k_fc2, maxval=k_fc2, dtype=jnp.float32)
    return w1, b1, w2, b2


def _ref(x, w1, b1, w2, b2):
    x_flat = x.reshape(x.shape[0], -1)
    return jnp.maximum(x_flat @ w1 + b1, 0.0) @ w2 + b2


if __name__ == "__main__":
    w1, b1, w2, b2 = _init_params()

    # Small deterministic example (batch=2, channels=4, width=150).
    B = 2
    x = jax.random.normal(jax.random.PRNGKey(0),
                          (B, INPUT_CHANNELS, INPUT_WIDTH), dtype=jnp.float32)
    out = mlp_forward(x, w1, b1, w2, b2)
    jax.block_until_ready(out)
    assert out.shape == (B, OUTPUT_UNITS)
    assert jnp.allclose(out, _ref(x, w1, b1, w2, b2), atol=1e-5, rtol=1e-5)

    # Extra check exercising the batch-tiled / padded-tail path (B not a
    # multiple of the tile).
    B2 = 37
    x2 = jax.random.normal(jax.random.PRNGKey(1),
                           (B2, INPUT_CHANNELS, INPUT_WIDTH), dtype=jnp.float32)
    out2 = mlp_forward(x2, w1, b1, w2, b2)
    jax.block_until_ready(out2)
    assert out2.shape == (B2, OUTPUT_UNITS)
    assert jnp.allclose(out2, _ref(x2, w1, b1, w2, b2), atol=1e-5, rtol=1e-5)

    print("KERNEL_OK")
</pallas_src>

<mosaic_0001>
module attributes {stable_mosaic.version = 11 : i64} {
  func.func @_mlp_kernel(%arg0: i32, %arg1: memref<8x640xf32, #tpu.memory_space<vmem>>, %arg2: memref<640x8xf32, #tpu.memory_space<vmem>>, %arg3: memref<1x8xf32, #tpu.memory_space<vmem>>, %arg4: memref<8x4xf32, #tpu.memory_space<vmem>>, %arg5: memref<1x4xf32, #tpu.memory_space<vmem>>, %arg6: memref<8x4xf32, #tpu.memory_space<vmem>>) attributes {dimension_semantics = [#tpu.dimension_semantics<parallel>], iteration_bounds = array<i64: 1>, scalar_prefetch = 0 : i64, scratch_operands = 0 : i64, tpu.core_type = #tpu.core_type<tc>, window_params = [{transform_indices = @transform_0, window_bounds = array<i64: 8, 640>}, {pipeline_mode = #tpu.pipeline_mode<synchronous>, transform_indices = @transform_1, window_bounds = array<i64: 640, 8>}, {pipeline_mode = #tpu.pipeline_mode<synchronous>, transform_indices = @transform_2, window_bounds = array<i64: 1, 8>}, {pipeline_mode = #tpu.pipeline_mode<synchronous>, transform_indices = @transform_3, window_bounds = array<i64: 8, 4>}, {pipeline_mode = #tpu.pipeline_mode<synchronous>, transform_indices = @transform_4, window_bounds = array<i64: 1, 4>}, {transform_indices = @transform_5, window_bounds = array<i64: 8, 4>}]} {
    %c0 = arith.constant 0 : index
    %c0_0 = arith.constant 0 : index
    %0 = vector.load %arg1[%c0, %c0_0] : memref<8x640xf32, #tpu.memory_space<vmem>>, vector<8x640xf32>
    %c0_1 = arith.constant 0 : index
    %c0_2 = arith.constant 0 : index
    %1 = vector.load %arg2[%c0_1, %c0_2] : memref<640x8xf32, #tpu.memory_space<vmem>>, vector<640x8xf32>
    %cst = arith.constant dense<0.000000e+00> : vector<8x8xf32>
    %2 = tpu.matmul %0, %1, %cst {dimension_numbers = #tpu.dot_dimension_numbers<[1], [0], [0], [1], [0, 0, 1, 1], [], []>} : vector<8x640xf32>, vector<640x8xf32>, vector<8x8xf32> -> vector<8x8xf32>
    %c0_3 = arith.constant 0 : index
    %c0_4 = arith.constant 0 : index
    %3 = vector.load %arg3[%c0_3, %c0_4] : memref<1x8xf32, #tpu.memory_space<vmem>>, vector<1x8xf32>
    %4 = vector.broadcast %3 : vector<1x8xf32> to vector<8x8xf32>
    %5 = arith.addf %2, %4 : vector<8x8xf32>
    %cst_5 = arith.constant 0.000000e+00 : f32
    %6 = vector.broadcast %cst_5 : f32 to vector<8x8xf32>
    %7 = arith.maximumf %5, %6 : vector<8x8xf32>
    %c0_6 = arith.constant 0 : index
    %c0_7 = arith.constant 0 : index
    %8 = vector.load %arg4[%c0_6, %c0_7] : memref<8x4xf32, #tpu.memory_space<vmem>>, vector<8x4xf32>
    %cst_8 = arith.constant dense<0.000000e+00> : vector<8x4xf32>
    %9 = tpu.matmul %7, %8, %cst_8 {dimension_numbers = #tpu.dot_dimension_numbers<[1], [0], [0], [1], [0, 0, 1, 1], [], []>} : vector<8x8xf32>, vector<8x4xf32>, vector<8x4xf32> -> vector<8x4xf32>
    %c0_9 = arith.constant 0 : index
    %c0_10 = arith.constant 0 : index
    %10 = vector.load %arg5[%c0_9, %c0_10] : memref<1x4xf32, #tpu.memory_space<vmem>>, vector<1x4xf32>
    %11 = vector.broadcast %10 : vector<1x4xf32> to vector<8x4xf32>
    %12 = arith.addf %9, %11 : vector<8x4xf32>
    %c0_11 = arith.constant 0 : index
    %c0_12 = arith.constant 0 : index
    %13 = vector.load %arg6[%c0_11, %c0_12] : memref<8x4xf32, #tpu.memory_space<vmem>>, vector<8x4xf32>
    tpu.vector_store %arg6[%c0_11, %c0_12], %12 {strides = array<i32>} : memref<8x4xf32, #tpu.memory_space<vmem>>, vector<8x4xf32>,
    return
  }
  func.func @transform_0(%arg0: i32) -> (i32, i32) {
    %c0_i32 = arith.constant 0 : i32
    %c0_i32_0 = arith.constant 0 : i32
    return %arg0, %c0_i32 : i32, i32
  }
  func.func @transform_1(%arg0: i32) -> (i32, i32) {
    %c0_i32 = arith.constant 0 : i32
    %c0_i32_0 = arith.constant 0 : i32
    %c0_i32_1 = arith.constant 0 : i32
    return %c0_i32, %c0_i32_0 : i32, i32
  }
  func.func @transform_2(%arg0: i32) -> (i32, i32) {
    %c0_i32 = arith.constant 0 : i32
    %c0_i32_0 = arith.constant 0 : i32
    %c0_i32_1 = arith.constant 0 : i32
    return %c0_i32, %c0_i32_0 : i32, i32
  }
  func.func @transform_3(%arg0: i32) -> (i32, i32) {
    %c0_i32 = arith.constant 0 : i32
    %c0_i32_0 = arith.constant 0 : i32
    %c0_i32_1 = arith.constant 0 : i32
    return %c0_i32, %c0_i32_0 : i32, i32
  }
  func.func @transform_4(%arg0: i32) -> (i32, i32) {
    %c0_i32 = arith.constant 0 : i32
    %c0_i32_0 = arith.constant 0 : i32
    %c0_i32_1 = arith.constant 0 : i32
    return %c0_i32, %c0_i32_0 : i32, i32
  }
  func.func @transform_5(%arg0: i32) -> (i32, i32) {
    %c0_i32 = arith.constant 0 : i32
    %c0_i32_0 = arith.constant 0 : i32
    return %arg0, %c0_i32 : i32, i32
  }
}

</mosaic_0001>

<bundles_post_ra>
// kernel: mlp_forward.1
= control target key start
LH: loop header
LB: loop body
LE: loop exit
PB: predicated region body
PF: predicated region fallthrough
CT: control target
= control target key end

     0   :  { %vm546_vm0 = vmmov 0   ;;  %vm331_vm1 = vcmask 64512   ;;  %vm405_vm2 = vcmask 31744   ;;  %s844_s1 = inlined_call_operand.vmem [shape: f32[640,8], index: 1, kind: input, shape index: {}]   ;;  %s845_s0 = inlined_call_operand.vmem [shape: f32[8,640], index: 0, kind: input, shape index: {}]   ;;  %s846_s3 = inlined_call_operand.vmem [shape: f32[8,4], index: 3, kind: input, shape index: {}]   ;;  %s847_s2 = inlined_call_operand.vmem [shape: f32[1,8], index: 2, kind: input, shape index: {}]   ;;  %s848_s4 = inlined_call_operand.vmem [shape: f32[1,4], index: 4, kind: input, shape index: {}]   ;;  %s849_s5 = inlined_call_operand.vmem [shape: f32[8,4], index: 5, kind: output, shape index: {}]  }
   0x1   :  { %v56_v0 = vld [vmem:[%s844_s1 + $0xf8] sm:$0xff]  ;;  %v55_v2 = vld [vmem:[%s844_s1 + $0xf0] sm:$0xff]  ;;  %v54_v6 = vld [vmem:[%s844_s1 + $0xe8] sm:$0xff] }
   0x2   :  { %v40_v1 = vld [vmem:[%s844_s1 + $0x78] sm:$0xff]  ;;  %414 = vmatprep.subr.mxu0 %v56_v0  ;;  %v39_v4 = vld [vmem:[%s844_s1 + $0x70] sm:$0xff]  ;;  %v38_v8 = vld [vmem:[%s844_s1 + $0x68] sm:$0xff] }
   0x3   :  { %v88_v3 = vld [vmem:[%s844_s1 + $0x1f8] sm:$0xff]  ;;  %415 = vmatpush3.msra.mxu0 %v40_v1  ;;  %v87_v7 = vld [vmem:[%s844_s1 + $0x1f0] sm:$0xff]  ;;  %v86_v10 = vld [vmem:[%s844_s1 + $0x1e8] sm:$0xff] }
   0x4   :  { %v72_v5 = vld [vmem:[%s844_s1 + $0x178] sm:$0xff]  ;;  %449 = vmatprep.subr.mxu1 %v88_v3  ;;  %416 = vmatprep.subr.mxu0 %v55_v2  ;;  %v71_v9 = vld [vmem:[%s844_s1 + $0x170] sm:$0xff]  ;;  %v53_v11 = vld [vmem:[%s844_s1 + $0xe0] sm:$0xff] }
   0x5   :  { %450 = vmatpush3.msra.mxu1 %v72_v5  ;;  %417 = vmatpush3.msra.mxu0 %v39_v4  ;;  %v70_v12 = vld [vmem:[%s844_s1 + $0x168] sm:$0xff]  ;;  %v37_v13 = vld [vmem:[%s844_s1 + $0x60] sm:$0xff]  ;;  %v52_v15 = vld [vmem:[%s844_s1 + $0xd8] sm:$0xff]  ;;  %v545_v5 = vmov 0.0  }
   0x6   :  { %451 = vmatprep.subr.mxu1 %v87_v7  ;;  %418 = vmatprep.subr.mxu0 %v54_v6  ;;  %v85_v14 = vld [vmem:[%s844_s1 + $0x1e0] sm:$0xff]  ;;  %v36_v17 = vld [vmem:[%s844_s1 + $0x58] sm:$0xff]  ;;  %v51_v19 = vld [vmem:[%s844_s1 + $0xd0] sm:$0xff] }
   0x7   :  { %452 = vmatpush3.msra.mxu1 %v71_v9  ;;  %419 = vmatpush3.msra.mxu0 %v38_v8  ;;  %v69_v16 = vld [vmem:[%s844_s1 + $0x160] sm:$0xff]  ;;  %v84_v18 = vld [vmem:[%s844_s1 + $0x1d8] sm:$0xff]  ;;  %v35_v21 = vld [vmem:[%s844_s1 + $0x50] sm:$0xff] }
   0x8   :  { %453 = vmatprep.subr.mxu1 %v86_v10  ;;  %420 = vmatprep.subr.mxu0 %v53_v11  ;;  %v68_v20 = vld [vmem:[%s844_s1 + $0x158] sm:$0xff]  ;;  %v83_v22 = vld [vmem:[%s844_s1 + $0x1d0] sm:$0xff]  ;;  %v50_v23 = vld [vmem:[%s844_s1 + $0xc8] sm:$0xff] }
   0x9   :  { %454 = vmatpush3.msra.mxu1 %v70_v12  ;;  %421 = vmatpush3.msra.mxu0 %v37_v13  ;;  %v67_v24 = vld [vmem:[%s844_s1 + $0x150] sm:$0xff]  ;;  %v34_v25 = vld [vmem:[%s844_s1 + $0x48] sm:$0xff]  ;;  %v49_v27 = vld [vmem:[%s844_s1 + $0xc0] sm:$0xff] }
   0xa   :  { %455 = vmatprep.subr.mxu1 %v85_v14  ;;  %422 = vmatprep.subr.mxu0 %v52_v15  ;;  %v82_v26 = vld [vmem:[%s844_s1 + $0x1c8] sm:$0xff]  ;;  %v33_v29 = vld [vmem:[%s844_s1 + $0x40] sm:$0xff]  ;;  %v48_v31 = vld [vmem:[%s844_s1 + $0xb8] sm:$0xff] }
   0xb   :  { %456 = vmatpush3.msra.mxu1 %v69_v16  ;;  %423 = vmatpush3.msra.mxu0 %v36_v17  ;;  %v66_v28 = vld [vmem:[%s844_s1 + $0x148] sm:$0xff]  ;;  %v81_v30 = vld [vmem:[%s844_s1 + $0x1c0] sm:$0xff]  ;;  %v32_v33 = vld [vmem:[%s844_s1 + $0x38] sm:$0xff] }
   0xc   :  { %457 = vmatprep.subr.mxu1 %v84_v18  ;;  %424 = vmatprep.subr.mxu0 %v51_v19  ;;  %v65_v32 = vld [vmem:[%s844_s1 + $0x140] sm:$0xff]  ;;  %v80_v34 = vld [vmem:[%s844_s1 + $0x1b8] sm:$0xff]  ;;  %v47_v35 = vld [vmem:[%s844_s1 + $0xb0] sm:$0xff] }
   0xd   :  { %458 = vmatpush3.msra.mxu1 %v68_v20  ;;  %425 = vmatpush3.msra.mxu0 %v35_v21  ;;  %v64_v36 = vld [vmem:[%s844_s1 + $0x138] sm:$0xff]  ;;  %v31_v37 = vld [vmem:[%s844_s1 + $0x30] sm:$0xff]  ;;  %v46_v39 = vld [vmem:[%s844_s1 + $0xa8] sm:$0xff] }
   0xe   :  { %459 = vmatprep.subr.mxu1 %v83_v22  ;;  %426 = vmatprep.subr.mxu0 %v50_v23  ;;  %v79_v38 = vld [vmem:[%s844_s1 + $0x1b0] sm:$0xff]  ;;  %v30_v41 = vld [vmem:[%s844_s1 + $0x28] sm:$0xff]  ;;  %v45_v43 = vld [vmem:[%s844_s1 + $0xa0] sm:$0xff] }
   0xf   :  { %460 = vmatpush3.msra.mxu1 %v67_v24  ;;  %427 = vmatpush3.msra.mxu0 %v34_v25  ;;  %v63_v40 = vld [vmem:[%s844_s1 + $0x130] sm:$0xff]  ;;  %v78_v42 = vld [vmem:[%s844_s1 + $0x1a8] sm:$0xff]  ;;  %v29_v45 = vld [vmem:[%s844_s1 + $0x20] sm:$0xff] }
  0x10   :  { %461 = vmatprep.subr.mxu1 %v82_v26  ;;  %428 = vmatprep.subr.mxu0 %v49_v27  ;;  %v62_v44 = vld [vmem:[%s844_s1 + $0x128] sm:$0xff]  ;;  %v77_v46 = vld [vmem:[%s844_s1 + $0x1a0] sm:$0xff]  ;;  %v44_v47 = vld [vmem:[%s844_s1 + $0x98] sm:$0xff] }
  0x11   :  { %462 = vmatpush3.msra.mxu1 %v66_v28  ;;  %429 = vmatpush3.msra.mxu0 %v33_v29  ;;  %v61_v48 = vld [vmem:[%s844_s1 + $0x120] sm:$0xff]  ;;  %v28_v49 = vld [vmem:[%s844_s1 + $0x18] sm:$0xff]  ;;  %v43_v51 = vld [vmem:[%s844_s1 + $0x90] sm:$0xff] }
  0x12   :  { %463 = vmatprep.subr.mxu1 %v81_v30  ;;  %430 = vmatprep.subr.mxu0 %v48_v31  ;;  %v76_v50 = vld [vmem:[%s844_s1 + $0x198] sm:$0xff]  ;;  %v27_v53 = vld [vmem:[%s844_s1 + $0x10] sm:$0xff]  ;;  %v42_v55 = vld [vmem:[%s844_s1 + $0x88] sm:$0xff] }
  0x13   :  { %464 = vmatpush3.msra.mxu1 %v65_v32  ;;  %431 = vmatpush3.msra.mxu0 %v32_v33  ;;  %v60_v52 = vld [vmem:[%s844_s1 + $0x118] sm:$0xff]  ;;  %v75_v54 = vld [vmem:[%s844_s1 + $0x190] sm:$0xff]  ;;  %v26_v57 = vld [vmem:[%s844_s1 + $0x8] sm:$0xff] }
  0x14   :  { %465 = vmatprep.subr.mxu1 %v80_v34  ;;  %432 = vmatprep.subr.mxu0 %v47_v35  ;;  %v59_v56 = vld [vmem:[%s844_s1 + $0x110] sm:$0xff]  ;;  %v74_v58 = vld [vmem:[%s844_s1 + $0x188] sm:$0xff]  ;;  %v41_v59 = vld [vmem:[%s844_s1 + $0x80] sm:$0xff] }
  0x15   :  { %466 = vmatpush3.msra.mxu1 %v64_v36  ;;  %433 = vmatpush3.msra.mxu0 %v31_v37  ;;  %v21_v60 = vld [vmem:[%s845_s0 + $0x8] sm:$0xff]  ;;  %v25_v61 = vld [vmem:[%s844_s1] sm:$0xff]  ;;  %v23_v2 = vld [vmem:[%s845_s0 + $0x18] sm:$0xff] }
  0x16   :  { %467 = vmatprep.subr.mxu1 %v79_v38  ;;  %434 = vmatprep.subr.mxu0 %v46_v39  ;;  %v58_v62 = vld [vmem:[%s844_s1 + $0x108] sm:$0xff]  ;;  %v20_v63 = vld [vmem:[%s845_s0] sm:$0xff]  ;;  %v104_v3 = vld [vmem:[%s844_s1 + $0x278] sm:$0xff] }
  0x17   :  { %468 = vmatpush3.msra.mxu1 %v63_v40  ;;  %435 = vmatpush3.msra.mxu0 %v30_v41  ;;  %v73_v0 = vld [vmem:[%s844_s1 + $0x180] sm:$0xff]  ;;  %v22_v4 = vld [vmem:[%s845_s0 + $0x10] sm:$0xff]  ;;  %v102_v7 = vld [vmem:[%s844_s1 + $0x268] sm:$0xff] }
  0x18   :  { %469 = vmatprep.subr.mxu1 %v78_v42  ;;  %436 = vmatprep.subr.mxu0 %v45_v43  ;;  %v57_v1 = vld [vmem:[%s844_s1 + $0x100] sm:$0xff]  ;;  %v103_v6 = vld [vmem:[%s844_s1 + $0x270] sm:$0xff]  ;;  %v100_v9 = vld [vmem:[%s844_s1 + $0x258] sm:$0xff] }
  0x19   :  { %470 = vmatpush3.msra.mxu1 %v62_v44  ;;  %437 = vmatpush3.msra.mxu0 %v29_v45  ;;  %v101_v8 = vld [vmem:[%s844_s1 + $0x260] sm:$0xff]  ;;  %v99_v10 = vld [vmem:[%s844_s1 + $0x250] sm:$0xff]  ;;  %v98_v11 = vld [vmem:[%s844_s1 + $0x248] sm:$0xff] }
  0x1a   :  { %471 = vmatprep.subr.mxu1 %v77_v46  ;;  %438 = vmatprep.subr.mxu0 %v44_v47  ;;  %v97_v12 = vld [vmem:[%s844_s1 + $0x240] sm:$0xff]  ;;  %v96_v13 = vld [vmem:[%s844_s1 + $0x238] sm:$0xff]  ;;  %v95_v14 = vld [vmem:[%s844_s1 + $0x230] sm:$0xff] }
  0x1b   :  { %472 = vmatpush3.msra.mxu1 %v61_v48  ;;  %439 = vmatpush3.msra.mxu0 %v28_v49  ;;  %v94_v15 = vld [vmem:[%s844_s1 + $0x228] sm:$0xff]  ;;  %v93_v16 = vld [vmem:[%s844_s1 + $0x220] sm:$0xff]  ;;  %v92_v17 = vld [vmem:[%s844_s1 + $0x218] sm:$0xff] }
  0x1c   :  { %473 = vmatprep.subr.mxu1 %v76_v50  ;;  %440 = vmatprep.subr.mxu0 %v43_v51  ;;  %v91_v18 = vld [vmem:[%s844_s1 + $0x210] sm:$0xff]  ;;  %v90_v19 = vld [vmem:[%s844_s1 + $0x208] sm:$0xff]  ;;  %v89_v20 = vld [vmem:[%s844_s1 + $0x200] sm:$0xff] }
  0x1d   :  { %474 = vmatpush3.msra.mxu1 %v60_v52  ;;  %441 = vmatpush3.msra.mxu0 %v27_v53  ;;  %v24_v21 = vld [vmem:[%s845_s0 + $0x20] sm:$0xff] }
  0x1e   :  { %475 = vmatprep.subr.mxu1 %v75_v54  ;;  %442 = vmatprep.subr.mxu0 %v42_v55  ;;  %v323_v22 = vld [vmem:[%s846_s3] sm:$0xff] }
  0x1f   :  { %476 = vmatpush3.msra.mxu1 %v59_v56  ;;  %443 = vmatpush3.msra.mxu0 %v26_v57  ;;  %v411_v27 = vld [vmem:[%s847_s2] ss:$0 sm:$0xff] }
  0x20   :  { %477 = vmatprep.subr.mxu1 %v74_v58  ;;  %444 = vmatprep.subr.mxu0 %v41_v59  ;;  %v412_v36 = vld [vmem:[%s848_s4] ss:$0 sm:$0xff] }
  0x21   :  { %176 = vmatprep.mubr.f32.mxu0 %v21_v60  ;;  %445 = vmatpush3.msra.mxu0 %v25_v61 }
  0x22   :  { %478 = vmatpush3.msra.mxu1 %v58_v62  ;;  %177 = vmatmul.mubr.f32.vlgmr.msra.gmra.mxu0 %v20_v63 }
  0x23   :  { %479 = vmatprep.subr.mxu1 %v73_v0  ;;  %503 = vmatprep.subr.mxu0 %v545_v5 }
  0x24   :  { %480 = vmatpush3.msra.mxu1 %v57_v1  ;;  %246 = vmatprep.mubr.f32.mxu1 %v23_v2 }
  0x25   :  { %504 = vmatpush3.msra.mxu0 %v104_v3  ;;  %247 = vmatmul.mubr.f32.vlgmr.msra.gmra.mxu1 %v22_v4 }
  0x26   :  { %505 = vmatprep.subr.mxu0 %v545_v5  ;;  %535 = vmatprep.mubr.msk.f32.mxu0 %vm546_vm0, %v545_v5 }
  0x27   :  { %506 = vmatpush3.msra.mxu0 %v103_v6  ;;  %538 = vmatprep.subr.mxu1 %v545_v5 }
  0x28   :  { %507 = vmatprep.subr.mxu0 %v545_v5  ;;  %540 = vmatprep.mubr.msk.f32.mxu1 %vm546_vm0, %v545_v5 }
  0x29   :  { %508 = vmatpush3.msra.mxu0 %v102_v7  ;;  %539 = vmatpush3.msra.mxu1 %v323_v22 }
  0x2a   :  { %509 = vmatprep.subr.mxu0 %v545_v5 }
  0x2b   :  { %510 = vmatpush3.msra.mxu0 %v101_v8 }
  0x2c   :  { %511 = vmatprep.subr.mxu0 %v545_v5 }
  0x2d   :  { %512 = vmatpush3.msra.mxu0 %v100_v9 }
  0x2e   :  { %513 = vmatprep.subr.mxu0 %v545_v5 }
  0x2f   :  { %514 = vmatpush3.msra.mxu0 %v99_v10 }
  0x30   :  { %515 = vmatprep.subr.mxu0 %v545_v5 }
  0x31   :  { %516 = vmatpush3.msra.mxu0 %v98_v11 }
  0x32   :  { %517 = vmatprep.subr.mxu0 %v545_v5 }
  0x33   :  { %518 = vmatpush3.msra.mxu0 %v97_v12 }
  0x34   :  { %519 = vmatprep.subr.mxu0 %v545_v5 }
  0x35   :  { %520 = vmatpush3.msra.mxu0 %v96_v13 }
  0x36   :  { %521 = vmatprep.subr.mxu0 %v545_v5 }
  0x37   :  { %522 = vmatpush3.msra.mxu0 %v95_v14 }
  0x38   :  { %523 = vmatprep.subr.mxu0 %v545_v5 }
  0x39   :  { %524 = vmatpush3.msra.mxu0 %v94_v15 }
  0x3a   :  { %525 = vmatprep.subr.mxu0 %v545_v5 }
  0x3b   :  { %526 = vmatpush3.msra.mxu0 %v93_v16 }
  0x3c   :  { %527 = vmatprep.subr.mxu0 %v545_v5 }
  0x3d   :  { %528 = vmatpush3.msra.mxu0 %v92_v17 }
  0x3e   :  { %529 = vmatprep.subr.mxu0 %v545_v5 }
  0x3f   :  { %530 = vmatpush3.msra.mxu0 %v91_v18 }
  0x40   :  { %531 = vmatprep.subr.mxu0 %v545_v5 }
  0x41   :  { %532 = vmatpush3.msra.mxu0 %v90_v19 }
  0x42   :  { %533 = vmatprep.subr.mxu0 %v545_v5 }
  0x43   :  { %534 = vmatpush3.msra.mxu0 %v89_v20 }
  0x44   :  { %536 = vmatmul.mubr.f32.vlgmr.msra.gmra.mxu0 %v24_v21 }
  0xe2   :  { %v446_v23 = vpop.f32.mrf.mxu0 }
  0xe4   :  { %v447_v24 = vpop.f32.mrf.mxu0 }
  0xe5   :  { %v481_v25 = vpop.f32.mrf.mxu1  ;;  %v448_v26 = vadd.f32 %v447_v24, %v446_v23 }
  0xe7   :  { %v482_v28 = vpop.f32.mrf.mxu1  ;;  %v179_v29 = vadd.f32 %v448_v26, %v411_v27 }
  0xe8   :  { %v483_v30 = vadd.f32 %v482_v28, %v481_v25 }
  0xea   :  { %v249_v31 = vadd.f32 %v483_v30, %v179_v29 }
 0x104   :  { %v318_v32 = vpop.f32.mrf.mxu0 }
 0x105   :  { %v319_v33 = vadd.f32 %v318_v32, %v249_v31 }
 0x106   :  { %v537_v34 = vpop.f32.mrf.mxu0 }
 0x107   :  { %v322_v35 = vmax.f32 %v319_v33, 0.0 }
 0x109   :  { %541 = vmatmul.mubr.msk.f32.vlgmr.msra.gmra.mxu1 %vm331_vm1, %v322_v35 }
 0x1c9   :  { %v401_v37 = vpop.f32.mrf.mxu1 }
 0x1ca   :  { %v402_v38 = vadd.f32 %v412_v36, %v401_v37 }
 0x1cb   :  { %v542_v39 = vpop.f32.mrf.mxu1 }
 0x1cc   :  { %406 = vst.msk [vmem:[%s849_s5] sm:$0xff] %vm405_vm2, %v402_v38 }

</bundles_post_ra>
